<compile_context>
chip_gen: v7x
topology: tpu7x:2x2x1
jax: 0.10.0
libtpu: 0.0.40
codegen_flags: <defaults>
</compile_context>

<pallas_src>
import functools

import jax
import jax.numpy as jnp
import numpy as np
from jax.experimental import pallas as pl
from jax.experimental.pallas import tpu as pltpu


_VMEM_LIMIT_BYTES = 32 * 1024 * 1024   # explicit scoped-VMEM limit (safe on v5e/v6e/v7x)
_VMEM_BLOCK_BUDGET = 20 * 1024 * 1024  # budget for 2x(input block) + 2x(output block)
_MAX_AUG_UNROLL = 64                   # bound on the static unroll over augmentations
_TB_CAP = 2048                         # max batch rows per tile


def _cdiv(a, b):
    return -(-a // b)


def _round_up(a, b):
    return _cdiv(a, b) * b


def _sublane_multiple(dtype):
    return {4: 8, 2: 16, 1: 32}.get(jnp.dtype(dtype).itemsize, 8)


def _weighted_sum_kernel(w_ref, x_ref, o_ref, *, n_augs, n_classes):
    """out[b, c] = sum_a w[a] * x[b, a*C + c].

    w_ref: SMEM (A,) f32    folded weights: (coeffs / sum(coeffs)) / temperature
    x_ref: VMEM (TB, A*C)   logits, batch on sublanes, (aug, class) flattened on lanes
    o_ref: VMEM (TB, C) f32
    """
    acc = w_ref[0] * x_ref[:, 0:n_classes].astype(jnp.float32)
    for a in range(1, n_augs):
        sl = x_ref[:, a * n_classes:(a + 1) * n_classes].astype(jnp.float32)
        acc = acc + w_ref[a] * sl
    o_ref[...] = acc


def _weighted_sum(x3, w):
    """x3: (B, A, C); w: (A,) f32.  Returns (B, C) float32."""
    B, A, C = x3.shape
    itemsize = jnp.dtype(x3.dtype).itemsize
    sub = _sublane_multiple(x3.dtype)

    # Free reshape of contiguous dims: native layout, no transpose / pad HBM pass.
    xflat = x3.reshape(B, A * C)

    # Batch tile: fit double-buffered in+out blocks in the VMEM budget, and aim for
    # >= 4 batch tiles when B allows so v7x's two TensorCores both get work.
    per_row = 2 * (A * C * itemsize + C * 4)
    budget_rows = max(sub, _VMEM_BLOCK_BUDGET // per_row)
    four_tiles = max(sub, _round_up(_cdiv(B, 4), sub))
    cap = min(_TB_CAP, budget_rows, four_tiles)
    cap = max(sub, (cap // sub) * sub)

    if B <= cap:
        tb, Bp = B, B                      # full-extent block: legal for any B, no padding
    else:
        tb = 0
        t = cap
        while t >= sub:                    # prefer a tile that divides B (no padding copy)
            if B % t == 0:
                tb = t
                break
            t -= sub
        if tb == 0:
            tb = cap                       # no suitable divisor: pad the batch (rare)
        Bp = _round_up(B, tb)
        if Bp != B:
            xflat = jnp.pad(xflat, ((0, Bp - B), (0, 0)))

    kernel = functools.partial(_weighted_sum_kernel, n_augs=A, n_classes=C)
    out = pl.pallas_call(
        kernel,
        out_shape=jax.ShapeDtypeStruct((Bp, C), jnp.float32),
        grid_spec=pltpu.PrefetchScalarGridSpec(
            num_scalar_prefetch=1,                         # w -> SMEM
            grid=(Bp // tb,),
            in_specs=[pl.BlockSpec((tb, A * C), lambda i, w_ref: (i, 0))],
            out_specs=pl.BlockSpec((tb, C), lambda i, w_ref: (i, 0)),
        ),
        compiler_params=pltpu.CompilerParams(
            dimension_semantics=("parallel",),
            vmem_limit_bytes=_VMEM_LIMIT_BYTES,
        ),
    )(w, xflat)

    return out[:B] if Bp != B else out     # slice only when batch padding was applied


def tta_partial_regression(x, coeffs, temperature=1.0):
    """Pallas forward of TTAPartialRegression.  x: (B, A, C); coeffs: (A, 1) or (A,)."""
    B, A, C = x.shape
    coeffs_f = coeffs.astype(jnp.float32).reshape(-1)
    assert coeffs_f.shape[0] == A
    # Fold temperature into the normalized coefficients (tiny XLA op, done once).
    w = (coeffs_f / jnp.sum(coeffs_f)) * jnp.float32(1.0 / float(temperature))

    # Bound the in-kernel unroll over augmentations and keep even the minimal
    # (sub-row) block within the VMEM budget; otherwise process aug chunks and sum.
    sub = _sublane_multiple(x.dtype)
    itemsize = jnp.dtype(x.dtype).itemsize
    row_budget = _VMEM_BLOCK_BUDGET // (2 * sub)
    a_max_vmem = max(1, (row_budget - 4 * C) // max(1, C * itemsize))
    a_chunk = max(1, min(A, _MAX_AUG_UNROLL, a_max_vmem))
    # TODO(synk): tile the class axis for extremely large n_classes where even an
    # 8-row, single-augmentation block exceeds the VMEM budget.

    if a_chunk >= A:
        out = _weighted_sum(x, w)
    else:
        out = None
        for a0 in range(0, A, a_chunk):
            part = _weighted_sum(x[:, a0:a0 + a_chunk, :], w[a0:a0 + a_chunk])
            out = part if out is None else out + part

    if out.dtype != x.dtype:
        out = out.astype(x.dtype)

    # Match torch's .squeeze(): drop size-1 batch / class dims.
    if B == 1 and C == 1:
        return out[0, 0]
    if B == 1:
        return out[0]
    if C == 1:
        return out[:, 0]
    return out


def _reference(x, coeffs, temperature):
    xs = x / temperature
    wn = coeffs.reshape(-1, 1) / jnp.sum(coeffs)
    return jnp.squeeze(jnp.matmul(jnp.swapaxes(xs, 1, 2), wn))


if __name__ == "__main__":
    key = jax.random.PRNGKey(0)

    cases = [
        (2, 4, 16, 2.0),    # single batch tile, no padding, no output slice
        (50, 6, 10, 1.7),   # multiple batch tiles, padded last tile
        (1, 3, 5, 1.0),     # B == 1 -> torch .squeeze() returns shape (C,)
    ]
    for (batch, n_augs, n_classes, temp) in cases:
        key, kx, kc = jax.random.split(key, 3)
        x = jax.random.normal(kx, (batch, n_augs, n_classes), dtype=jnp.float32)
        # 'even' initialization (1/n_augs) plus a small perturbation so the
        # normalization is exercised non-trivially.
        coeffs = jnp.full((n_augs, 1), 1.0 / n_augs, dtype=jnp.float32)
        coeffs = coeffs + 0.05 * jax.random.normal(kc, (n_augs, 1), dtype=jnp.float32)

        out = jax.block_until_ready(tta_partial_regression(x, coeffs, temperature=temp))
        expected = _reference(x, coeffs, temp)
        assert out.shape == expected.shape, (out.shape, expected.shape)
        np.testing.assert_allclose(np.asarray(out), np.asarray(expected),
                                   rtol=1e-5, atol=1e-5)

    print("KERNEL_OK")
</pallas_src>

<mosaic_0001>
module attributes {stable_mosaic.version = 11 : i64} {
  func.func @_weighted_sum_kernel(%arg0: i32, %arg1: memref<4xf32, #tpu.memory_space<smem>>, %arg2: memref<2x64xf32, #tpu.memory_space<vmem>>, %arg3: memref<2x16xf32, #tpu.memory_space<vmem>>) attributes {dimension_semantics = [#tpu.dimension_semantics<parallel>], iteration_bounds = array<i64: 1>, scalar_prefetch = 1 : i64, scratch_operands = 0 : i64, tpu.core_type = #tpu.core_type<tc>, window_params = [{transform_indices = @transform_0, window_bounds = array<i64: 2, 64>}, {transform_indices = @transform_1, window_bounds = array<i64: 2, 16>}]} {
    %c0 = arith.constant 0 : index
    %0 = memref.load %arg1[%c0] : memref<4xf32, #tpu.memory_space<smem>>
    %c0_0 = arith.constant 0 : index
    %c0_1 = arith.constant 0 : index
    %1 = vector.load %arg2[%c0_0, %c0_1] : memref<2x64xf32, #tpu.memory_space<vmem>>, vector<2x16xf32>
    %2 = vector.broadcast %0 : f32 to vector<2x16xf32>
    %3 = arith.mulf %2, %1 : vector<2x16xf32>
    %c0_2 = arith.constant 0 : index
    %c16 = arith.constant 16 : index
    %4 = vector.load %arg2[%c0_2, %c16] : memref<2x64xf32, #tpu.memory_space<vmem>>, vector<2x16xf32>
    %c1 = arith.constant 1 : index
    %5 = memref.load %arg1[%c1] : memref<4xf32, #tpu.memory_space<smem>>
    %6 = vector.broadcast %5 : f32 to vector<2x16xf32>
    %7 = arith.mulf %6, %4 : vector<2x16xf32>
    %8 = arith.addf %3, %7 : vector<2x16xf32>
    %c0_3 = arith.constant 0 : index
    %c32 = arith.constant 32 : index
    %9 = vector.load %arg2[%c0_3, %c32] : memref<2x64xf32, #tpu.memory_space<vmem>>, vector<2x16xf32>
    %c2 = arith.constant 2 : index
    %10 = memref.load %arg1[%c2] : memref<4xf32, #tpu.memory_space<smem>>
    %11 = vector.broadcast %10 : f32 to vector<2x16xf32>
    %12 = arith.mulf %11, %9 : vector<2x16xf32>
    %13 = arith.addf %8, %12 : vector<2x16xf32>
    %c0_4 = arith.constant 0 : index
    %c48 = arith.constant 48 : index
    %14 = vector.load %arg2[%c0_4, %c48] : memref<2x64xf32, #tpu.memory_space<vmem>>, vector<2x16xf32>
    %c3 = arith.constant 3 : index
    %15 = memref.load %arg1[%c3] : memref<4xf32, #tpu.memory_space<smem>>
    %16 = vector.broadcast %15 : f32 to vector<2x16xf32>
    %17 = arith.mulf %16, %14 : vector<2x16xf32>
    %18 = arith.addf %13, %17 : vector<2x16xf32>
    %c0_5 = arith.constant 0 : index
    %c0_6 = arith.constant 0 : index
    %19 = vector.load %arg3[%c0_5, %c0_6] : memref<2x16xf32, #tpu.memory_space<vmem>>, vector<2x16xf32>
    tpu.vector_store %arg3[%c0_5, %c0_6], %18 {strides = array<i32>} : memref<2x16xf32, #tpu.memory_space<vmem>>, vector<2x16xf32>,
    return
  }
  func.func @transform_0(%arg0: i32, %arg1: memref<4xf32, #tpu.memory_space<smem>>) -> (i32, i32) {
    %c0_i32 = arith.constant 0 : i32
    %c0_i32_0 = arith.constant 0 : i32
    return %arg0, %c0_i32 : i32, i32
  }
  func.func @transform_1(%arg0: i32, %arg1: memref<4xf32, #tpu.memory_space<smem>>) -> (i32, i32) {
    %c0_i32 = arith.constant 0 : i32
    %c0_i32_0 = arith.constant 0 : i32
    return %arg0, %c0_i32 : i32, i32
  }
}

</mosaic_0001>

<bundles_post_ra>
// kernel: tpu_custom_call.1
= control target key start
LH: loop header
LB: loop body
LE: loop exit
PB: predicated region body
PF: predicated region fallthrough
CT: control target
= control target key end

     0   :  { %s149_s0 = inlined_call_operand.hbm [shape: f32[4], index: 0, kind: input, shape index: {}]   ;;  %s150_s1 = inlined_call_operand.vmem [shape: f32[2,64], index: 1, kind: input, shape index: {}]   ;;  %s151_s2 = inlined_call_operand.hbm [shape: f32[2,16], index: 2, kind: output, shape index: {}]  }
   0x1   :  { %s66_s11 = scalar_lea.hbm %s149_s0, 16 }
   0x2   :  { %p67_p0 = scmp.ne.s32.totalorder %s149_s0, %s66_s11  ;;  %p70_p1 = scmp.lt.u32.totalorder %s66_s11, %s149_s0 }
   0x4   :  { %p72_p2 = pnand %p70_p1, %p67_p0 }
   0x6   :  { %75 = shalt.err (!%p72_p2)  }
   0x7   :  { %s102_s16 = smov [#allocation3]  }
   0x8   :  { %8 = dma.hbm_to_smem %s149_s0, 16, %s102_s16, [#allocation2] }
   0x9   :  { %98 = dma.done.wait [#allocation2], 16 }
   0xa   :  { %99 = vsyncadd [#allocation2], 4294967280 }
   0xb   :  { %10 = sfence }
   0xc   :  { %s58_s19 = sld [smem:[#allocation3 + $0x1]]  ;;  %s59_s20 = sld [smem:[#allocation3 + $0x2]] }
   0xd   :  { %11 = vsyncpa [#allocation5], 0  ;;  %s60_s21 = sld [smem:[#allocation3 + $0x3]]  ;;  %v15_v0 = vld [vmem:[%s150_s1] sm:$0x3]  ;;  %s103_s24 = smov 112  }
   0xe   :  { %s104_s0 = smov 80   ;;  %s105_s25 = smov 96   ;;  %vm42_vm0 = vcmask 123904  }
   0xf   :  { %s14_s26 = sld [smem:[#allocation3]]  ;;  %s106_s1 = smov [#allocation4]  }
  0x10   :  { %s50_s27 = sshll.u32 %s106_s1, 4  ;;  %s51_s27 = int_to_ptr.vmem [resolvable:$true] %s50_s27 }
  0x11   :  { %s76_s28 = scalar_lea.vmem %s51_s27, 32  ;;  %p81_p4 = scmp.lt.s32.totalorder %s51_s27, %s51_s27 }
  0x12   :  { %v19_v1 = vstv %s58_s19  ;;  %v27_v3 = vstv %s59_s20  ;;  %p77_p3 = scmp.ne.s32.totalorder %s51_s27, %s76_s28  ;;  %p82_p5 = scmp.lt.s32.totalorder %s76_s28, %s76_s28 }
  0x13   :  { %v20_v2 = vmul.f32 %v19_v1, %v15_v0  ;;  %v35_v4 = vstv %s60_s21  ;;  %v28_v5 = vmul.f32 %v27_v3, %v15_v0 }
  0x14   :  { %v36_v6 = vmul.f32 %v35_v4, %v15_v0  ;;  %p83_p6 = por %p82_p5, %p81_p4 }
  0x15   :  { %22 = vrot.lane.b32.xlu0 %v20_v2, %s103_s24  ;;  %v16_v7 = vstv %s14_s26 }
  0x16   :  { %38 = vrot.lane.b32.xlu1 %v36_v6, %s104_s0  ;;  %v17_v8 = vmul.f32 %v16_v7, %v15_v0  ;;  %p84_p7 = pnand %p83_p6, %p77_p3 }
  0x19   :  { %30 = vrot.lane.b32.xlu0 %v28_v5, %s105_s25 }
  0x87   :  { %v23_v9 = vpop.permute.xlu0 %22 }
  0x88   :  { %v25_v10 = vadd.f32 %v23_v9, %v17_v8  ;;  %v39_v12 = vpop.permute.xlu1 %38 }
  0x8b   :  { %v31_v11 = vpop.permute.xlu0 %30 }
  0x8c   :  { %v33_v13 = vadd.f32 %v31_v11, %v25_v10 }
  0x8e   :  { %v41_v14 = vadd.f32 %v39_v12, %v33_v13 }
  0x90   :  { %43 = vst.msk [vmem:[#allocation4] sm:$0x3] %vm42_vm0, %v41_v14 }
  0x91   :  { %87 = shalt.err (!%p84_p7)
}
  0x92   :  { %s88_s3 = scalar_lea.hbm %s151_s2, 32 }
  0x93   :  { %p89_p8 = scmp.ne.s32.totalorder %s151_s2, %s88_s3  ;;  %p92_p9 = scmp.lt.u32.totalorder %s88_s3, %s151_s2 }
  0x95   :  { %p94_p10 = pnand %p92_p9, %p89_p8 }
  0x97   :  { %97 = shalt.err (!%p94_p10)
}
  0x98   :  { %53 = dma.vmem_to_hbm [thread:$0]  %s51_s27, 32, %s151_s2, [#allocation5]  }
  0x99   :  { %100 = dma.done.wait [#allocation5], 32  }
  0x9a   :  { %101 = vsyncadd [#allocation5], 4294967264 }
  0x9b   :  { %57 = vsyncpa [#allocation5], 1 }

</bundles_post_ra>
